<compile_context>
chip_gen: v7x
topology: tpu7x:2x2x1
jax: 0.10.0
libtpu: 0.0.40
codegen_flags: <defaults>
</compile_context>

<pallas_src>
import jax
import jax.numpy as jnp
from jax.experimental import pallas as pl
from jax.experimental.pallas import tpu as pltpu

LANES = 128
DEFAULT_TILE_ROWS = 4096   # rows of 128 lanes per grid step (2 MiB f32 / input)
MAX_TILE_ROWS = 8192
N_OUTER = 2                # parallel axis: shards blocks across v7x's 2 TensorCores


def _make_exp_loss_kernel(alpha, rows, tr, acc_rows, n_inner):
    """Sum exp(-alpha*yt*yp) over this core's blocks into an (acc_rows,128) slab."""
    neg_alpha = -float(alpha)

    def _fold(yt_ref, yp_ref, out_ref, valid_rows, masked):
        yt = yt_ref[...].astype(jnp.float32)
        yp = yp_ref[...].astype(jnp.float32)
        if alpha == 1.0:
            val = jnp.exp(-(yt * yp))
        else:
            val = jnp.exp(neg_alpha * (yt * yp))
        if masked:
            # Zero out rows that fall outside the array (partial last block) and
            # entire duplicate blocks (valid_rows <= 0 for clamped indices).
            row_ids = jax.lax.broadcasted_iota(jnp.int32, (tr, LANES), 0)
            val = jnp.where(row_ids < valid_rows, val, 0.0)
        # (tr,128) -> (acc_rows,128): vreg-wise VPU adds only, acc_rows/8
        # independent chains; no cross-lane/sublane reduce on the hot path.
        out_ref[...] += val.reshape(-1, acc_rows, LANES).sum(axis=0)

    def kernel(yt_ref, yp_ref, out_ref):
        i = pl.program_id(0)   # parallel (per-core) axis
        j = pl.program_id(1)   # sequential reduction axis

        @pl.when(j == 0)
        def _():
            out_ref[...] = jnp.zeros_like(out_ref)

        blk = i * n_inner + j          # logical (unclamped) block id
        valid_rows = rows - blk * tr   # rows of this block inside the array

        @pl.when(valid_rows >= tr)     # fully-valid block: unmasked fast path
        def _():
            _fold(yt_ref, yp_ref, out_ref, valid_rows, masked=False)

        @pl.when(valid_rows < tr)      # partial last block / clamped duplicate
        def _():
            _fold(yt_ref, yp_ref, out_ref, valid_rows, masked=True)

    return kernel


def exponential_loss(y_true, y_pred, alpha=1.0, tile_rows=DEFAULT_TILE_ROWS):
    """Pallas TPU implementation of mean(exp(-alpha * y_true * y_pred))."""
    assert y_true.shape == y_pred.shape
    n = y_true.size
    alpha = float(alpha)

    # Keep the native dtype through the DMA (bf16 inputs stay bf16 -> half the
    # HBM bytes); the cast to f32 happens per-block inside the kernel.
    yt = jnp.ravel(y_true)
    yp = jnp.ravel(y_pred)

    rows = n // LANES
    n_lane = rows * LANES
    total = jnp.float32(0.0)

    if rows >= 16:
        # Tile rows: always a multiple of 16 (bf16 sublane tiling), capped by the
        # array and MAX_TILE_ROWS; prefer a multiple of 64 so the per-block fold
        # yields 8 independent accumulator vregs.
        tr = max(16, min(int(tile_rows), MAX_TILE_ROWS, rows))
        tr = (tr // 16) * 16
        if tr >= 64:
            tr = (tr // 64) * 64
        acc_rows = 64 if tr % 64 == 0 else (32 if tr % 32 == 0 else 16)

        # No-op slice when n is a multiple of 128; otherwise drops only the <128
        # element remainder (handled on the jnp path below).
        yt_main = yt[:n_lane].reshape(rows, LANES)
        yp_main = yp[:n_lane].reshape(rows, LANES)

        n_blocks = pl.cdiv(rows, tr)
        n_inner = pl.cdiv(n_blocks, N_OUTER)

        def in_map(i, j):
            # Clamp so trailing (duplicate) iterations read a valid block; their
            # contribution is masked out in-kernel via valid_rows <= 0.
            return (jnp.minimum(i * n_inner + j, n_blocks - 1), 0)

        kernel = _make_exp_loss_kernel(alpha, rows, tr, acc_rows, n_inner)

        itemsize = jnp.dtype(yt.dtype).itemsize
        in_block_bytes = tr * LANES * itemsize
        f32_block_bytes = tr * LANES * 4
        # 2 inputs x 2 pipeline buffers + headroom for the in-kernel f32
        # temporaries; floor at 32 MiB, cap below v7x's 64 MiB physical VMEM.
        vmem_limit = int(min(56 << 20,
                             max(32 << 20,
                                 4 * in_block_bytes + 12 * f32_block_bytes + (4 << 20))))

        partials = pl.pallas_call(
            kernel,
            out_shape=jax.ShapeDtypeStruct((N_OUTER, acc_rows, LANES), jnp.float32),
            grid_spec=pltpu.PrefetchScalarGridSpec(
                num_scalar_prefetch=0,
                grid=(N_OUTER, n_inner),
                in_specs=[
                    pl.BlockSpec((tr, LANES), in_map),
                    pl.BlockSpec((tr, LANES), in_map),
                ],
                # Output block index is constant across j -> VMEM-resident
                # accumulator; no scratch and no epilogue copy.
                out_specs=pl.BlockSpec((None, acc_rows, LANES),
                                       lambda i, j: (i, 0, 0)),
            ),
            compiler_params=pltpu.CompilerParams(
                dimension_semantics=("parallel", "arbitrary"),
                vmem_limit_bytes=vmem_limit,
            ),
            cost_estimate=pl.CostEstimate(
                flops=int(3 * n_lane),
                transcendentals=int(n_lane),
                bytes_accessed=int(2 * n_lane * itemsize
                                   + N_OUTER * acc_rows * LANES * 4),
            ),
        )(yt_main, yp_main)
        total = total + jnp.sum(partials)
    else:
        n_lane = 0   # tiny input: reduce everything on the jnp path

    # Sub-lane tail (< 128 elements; or the whole tiny input): plain jnp.
    if n_lane < n:
        yt_t = yt[n_lane:].astype(jnp.float32)
        yp_t = yp[n_lane:].astype(jnp.float32)
        total = total + jnp.sum(jnp.exp((-alpha) * (yt_t * yp_t)))

    return total / jnp.float32(n)


if __name__ == "__main__":
    key = jax.random.PRNGKey(0)
    k1, k2, k3, k4, k5, k6 = jax.random.split(key, 6)
    alpha = 1.0

    # Primary check: NCHW-like tensor (block-aligned kernel path, single block).
    x_shape = (2, 4, 16, 16)
    y_true = jax.random.normal(k1, x_shape, dtype=jnp.float32)
    y_pred = jax.random.normal(k2, x_shape, dtype=jnp.float32)
    out = exponential_loss(y_true, y_pred, alpha=alpha)
    out = jax.block_until_ready(out)
    ref = jnp.mean(jnp.exp(-alpha * (y_true * y_pred)))
    assert jnp.allclose(out, ref, rtol=1e-5, atol=1e-5), (out, ref)

    # Ragged check: partial last block masked in-kernel + <128-element jnp tail.
    x_shape2 = (3, 5, 17, 13)
    y_true2 = jax.random.normal(k3, x_shape2, dtype=jnp.float32)
    y_pred2 = jax.random.normal(k4, x_shape2, dtype=jnp.float32)
    out2 = exponential_loss(y_true2, y_pred2, alpha=alpha)
    out2 = jax.block_until_ready(out2)
    ref2 = jnp.mean(jnp.exp(-alpha * (y_true2 * y_pred2)))
    assert jnp.allclose(out2, ref2, rtol=1e-5, atol=1e-5), (out2, ref2)

    # Multi-block check: forces several reduction steps per core (acc_rows=64).
    x_shape3 = (8, 4, 32, 128)
    y_true3 = jax.random.normal(k5, x_shape3, dtype=jnp.float32)
    y_pred3 = jax.random.normal(k6, x_shape3, dtype=jnp.float32)
    out3 = exponential_loss(y_true3, y_pred3, alpha=alpha, tile_rows=256)
    out3 = jax.block_until_ready(out3)
    ref3 = jnp.mean(jnp.exp(-alpha * (y_true3 * y_pred3)))
    assert jnp.allclose(out3, ref3, rtol=1e-5, atol=1e-5), (out3, ref3)

    print("KERNEL_OK")
</pallas_src>

<mosaic_0001>
module attributes {stable_mosaic.version = 11 : i64} {
  func.func @kernel(%arg0: i32, %arg1: i32, %arg2: memref<16x128xf32, #tpu.memory_space<vmem>>, %arg3: memref<16x128xf32, #tpu.memory_space<vmem>>, %arg4: memref<1x16x128xf32, #tpu.memory_space<vmem>>) attributes {dimension_semantics = [#tpu.dimension_semantics<parallel>, #tpu.dimension_semantics<arbitrary>], iteration_bounds = array<i64: 2, 1>, scalar_prefetch = 0 : i64, scratch_operands = 0 : i64, tpu.core_type = #tpu.core_type<tc>, window_params = [{transform_indices = @transform_0, window_bounds = array<i64: 16, 128>}, {transform_indices = @transform_1, window_bounds = array<i64: 16, 128>}, {transform_indices = @transform_2, window_bounds = array<i64: 1, 16, 128>}]} {
    %c0_i32 = arith.constant 0 : i32
    %0 = arith.cmpi eq, %arg1, %c0_i32 : i32
    %1 = arith.extui %0 : i1 to i32
    %c0_i32_0 = arith.constant 0 : i32
    %2 = arith.cmpi ne, %1, %c0_i32_0 : i32
    scf.if %2 {
      %cst = arith.constant 0.000000e+00 : f32
      %13 = vector.broadcast %cst : f32 to vector<16x128xf32>
      %c0 = arith.constant 0 : index
      %c0_6 = arith.constant 0 : index
      %c0_7 = arith.constant 0 : index
      %14 = vector.load %arg4[%c0, %c0_6, %c0_7] : memref<1x16x128xf32, #tpu.memory_space<vmem>>, vector<1x16x128xf32>
      %15 = vector.shape_cast %14 : vector<1x16x128xf32> to vector<16x128xf32>
      %16 = vector.shape_cast %13 : vector<16x128xf32> to vector<1x16x128xf32>
      tpu.vector_store %arg4[%c0, %c0_6, %c0_7], %16 {strides = array<i32>} : memref<1x16x128xf32, #tpu.memory_space<vmem>>, vector<1x16x128xf32>,
    } else {
    }
    %c1_i32 = arith.constant 1 : i32
    %3 = arith.muli %arg0, %c1_i32 : i32
    %4 = arith.addi %3, %arg1 : i32
    %c16_i32 = arith.constant 16 : i32
    %5 = arith.muli %4, %c16_i32 : i32
    %c16_i32_1 = arith.constant 16 : i32
    %6 = arith.subi %c16_i32_1, %5 : i32
    %c16_i32_2 = arith.constant 16 : i32
    %7 = arith.cmpi sge, %6, %c16_i32_2 : i32
    %8 = arith.extui %7 : i1 to i32
    %c0_i32_3 = arith.constant 0 : i32
    %9 = arith.cmpi ne, %8, %c0_i32_3 : i32
    scf.if %9 {
      %c0 = arith.constant 0 : index
      %c0_6 = arith.constant 0 : index
      %13 = vector.load %arg2[%c0, %c0_6] : memref<16x128xf32, #tpu.memory_space<vmem>>, vector<16x128xf32>
      %c0_7 = arith.constant 0 : index
      %c0_8 = arith.constant 0 : index
      %14 = vector.load %arg3[%c0_7, %c0_8] : memref<16x128xf32, #tpu.memory_space<vmem>>, vector<16x128xf32>
      %15 = arith.mulf %13, %14 : vector<16x128xf32>
      %cst = arith.constant 0.000000e+00 : f32
      %16 = vector.broadcast %cst : f32 to vector<16x128xf32>
      %17 = arith.subf %16, %15 : vector<16x128xf32>
      %18 = math.exp %17 : vector<16x128xf32>
      %c0_9 = arith.constant 0 : index
      %c0_10 = arith.constant 0 : index
      %c0_11 = arith.constant 0 : index
      %19 = vector.load %arg4[%c0_9, %c0_10, %c0_11] : memref<1x16x128xf32, #tpu.memory_space<vmem>>, vector<1x16x128xf32>
      %20 = vector.shape_cast %19 : vector<1x16x128xf32> to vector<16x128xf32>
      %21 = vector.shape_cast %18 : vector<16x128xf32> to vector<1x16x128xf32>
      %cst_12 = arith.constant dense<0.000000e+00> : vector<16x128xf32>
      %22 = vector.multi_reduction <add>, %21, %cst_12 [0] : vector<1x16x128xf32> to vector<16x128xf32>
      %23 = arith.addf %20, %22 : vector<16x128xf32>
      %c0_13 = arith.constant 0 : index
      %c0_14 = arith.constant 0 : index
      %c0_15 = arith.constant 0 : index
      %24 = vector.load %arg4[%c0_13, %c0_14, %c0_15] : memref<1x16x128xf32, #tpu.memory_space<vmem>>, vector<1x16x128xf32>
      %25 = vector.shape_cast %24 : vector<1x16x128xf32> to vector<16x128xf32>
      %26 = vector.shape_cast %23 : vector<16x128xf32> to vector<1x16x128xf32>
      tpu.vector_store %arg4[%c0_13, %c0_14, %c0_15], %26 {strides = array<i32>} : memref<1x16x128xf32, #tpu.memory_space<vmem>>, vector<1x16x128xf32>,
    } else {
    }
    %c16_i32_4 = arith.constant 16 : i32
    %10 = arith.cmpi slt, %6, %c16_i32_4 : i32
    %11 = arith.extui %10 : i1 to i32
    %c0_i32_5 = arith.constant 0 : i32
    %12 = arith.cmpi ne, %11, %c0_i32_5 : i32
    scf.if %12 {
      %c0 = arith.constant 0 : index
      %c0_6 = arith.constant 0 : index
      %13 = vector.load %arg2[%c0, %c0_6] : memref<16x128xf32, #tpu.memory_space<vmem>>, vector<16x128xf32>
      %c0_7 = arith.constant 0 : index
      %c0_8 = arith.constant 0 : index
      %14 = vector.load %arg3[%c0_7, %c0_8] : memref<16x128xf32, #tpu.memory_space<vmem>>, vector<16x128xf32>
      %15 = arith.mulf %13, %14 : vector<16x128xf32>
      %cst = arith.constant 0.000000e+00 : f32
      %16 = vector.broadcast %cst : f32 to vector<16x128xf32>
      %17 = arith.subf %16, %15 : vector<16x128xf32>
      %18 = math.exp %17 : vector<16x128xf32>
      %19 = tpu.iota {dimensions = array<i32: 0>} : vector<16x128xi32>
      %20 = vector.broadcast %6 : i32 to vector<16x128xi32>
      %21 = arith.cmpi slt, %19, %20 : vector<16x128xi32>
      %cst_9 = arith.constant 0.000000e+00 : f32
      %22 = vector.broadcast %cst_9 : f32 to vector<16x128xf32>
      %23 = arith.select %21, %18, %22 : vector<16x128xi1>, vector<16x128xf32>
      %c0_10 = arith.constant 0 : index
      %c0_11 = arith.constant 0 : index
      %c0_12 = arith.constant 0 : index
      %24 = vector.load %arg4[%c0_10, %c0_11, %c0_12] : memref<1x16x128xf32, #tpu.memory_space<vmem>>, vector<1x16x128xf32>
      %25 = vector.shape_cast %24 : vector<1x16x128xf32> to vector<16x128xf32>
      %26 = vector.shape_cast %23 : vector<16x128xf32> to vector<1x16x128xf32>
      %cst_13 = arith.constant dense<0.000000e+00> : vector<16x128xf32>
      %27 = vector.multi_reduction <add>, %26, %cst_13 [0] : vector<1x16x128xf32> to vector<16x128xf32>
      %28 = arith.addf %25, %27 : vector<16x128xf32>
      %c0_14 = arith.constant 0 : index
      %c0_15 = arith.constant 0 : index
      %c0_16 = arith.constant 0 : index
      %29 = vector.load %arg4[%c0_14, %c0_15, %c0_16] : memref<1x16x128xf32, #tpu.memory_space<vmem>>, vector<1x16x128xf32>
      %30 = vector.shape_cast %29 : vector<1x16x128xf32> to vector<16x128xf32>
      %31 = vector.shape_cast %28 : vector<16x128xf32> to vector<1x16x128xf32>
      tpu.vector_store %arg4[%c0_14, %c0_15, %c0_16], %31 {strides = array<i32>} : memref<1x16x128xf32, #tpu.memory_space<vmem>>, vector<1x16x128xf32>,
    } else {
    }
    return
  }
  func.func @transform_0(%arg0: i32, %arg1: i32) -> (i32, i32) {
    %c1_i32 = arith.constant 1 : i32
    %0 = arith.muli %arg0, %c1_i32 : i32
    %1 = arith.addi %0, %arg1 : i32
    %c0_i32 = arith.constant 0 : i32
    %2 = arith.minsi %1, %c0_i32 : i32
    %c0_i32_0 = arith.constant 0 : i32
    %c0_i32_1 = arith.constant 0 : i32
    return %2, %c0_i32_0 : i32, i32
  }
  func.func @transform_1(%arg0: i32, %arg1: i32) -> (i32, i32) {
    %c1_i32 = arith.constant 1 : i32
    %0 = arith.muli %arg0, %c1_i32 : i32
    %1 = arith.addi %0, %arg1 : i32
    %c0_i32 = arith.constant 0 : i32
    %2 = arith.minsi %1, %c0_i32 : i32
    %c0_i32_0 = arith.constant 0 : i32
    %c0_i32_1 = arith.constant 0 : i32
    return %2, %c0_i32_0 : i32, i32
  }
  func.func @transform_2(%arg0: i32, %arg1: i32) -> (i32, i32, i32) {
    %c0_i32 = arith.constant 0 : i32
    %c0_i32_0 = arith.constant 0 : i32
    %c0_i32_1 = arith.constant 0 : i32
    return %arg0, %c0_i32, %c0_i32_0 : i32, i32, i32
  }
}

</mosaic_0001>

<bundles_post_ra>
// kernel: tpu_custom_call.1
= control target key start
LH: loop header
LB: loop body
LE: loop exit
PB: predicated region body
PF: predicated region fallthrough
CT: control target
= control target key end

     0   :  { %7 = vsyncpa [#allocation3], 0  ;;  %s985_s0 = inlined_call_operand.hbm [shape: f32[16,128], index: 0, kind: input, shape index: {}]   ;;  %s986_s1 = inlined_call_operand.hbm [shape: f32[16,128], index: 1, kind: input, shape index: {}]   ;;  %s987_s2 = inlined_call_operand.hbm [shape: f32[2,16,128], index: 2, kind: output, shape index: {}]  }
   0x1   :  { %9 = vsyncpa [#allocation3 + $0x1], 0 }
   0x2   :  { %10 = vsyncpa [#allocation6], 0 }
   0x3   :  { %12 = vsyncpa [#allocation6 + $0x1], 0 }
   0x4   :  { %13 = vsyncpa [#allocation4], 0 }
   0x5   :  { %15 = vsyncpa [#allocation4 + $0x1], 0  ;;  %s744_s9 = smov 0   ;;  %s746_s10 = smov 0  }
   0x6   :  { %s748_s11 = smov 0   ;;  %s750_s12 = smov 0  }
   0x7   :  { %s752_s13 = smov 0   ;;  %s754_s14 = smov 0  }
   0x8   :  { %s756_s15 = smov 0   ;;  %s758_s16 = smov 0  }
   0x9 LB: > { %s423_s17 = sadd.s32 4294967295, %s719_s16   ;;  %s424_s18 = sadd.s32 4294967294, %s719_s16   ;;  %s719_s16 = sphi %s758_s16, %s21_s16   ;;  %s715_s15 = sphi %s756_s15, %s1006_s15   ;;  %s711_s14 = sphi %s754_s14, %s1005_s14   ;;  %s707_s13 = sphi %s752_s13, %s975_s13   ;;  %s703_s12 = sphi %s750_s12, %s1004_s12   ;;  %s699_s11 = sphi %s748_s11, %s1003_s11   ;;  %s695_s10 = sphi %s746_s10, %s1002_s10   ;;  %s691_s9 = sphi %s744_s9, %s1001_s9  }
   0xa   : > { %s33_s19 = sadd.s32 1, %s715_s15  ;;  %p688_p1 = scmp.ne.s32.totalorder %s707_s13, 0 }
   0xb   : > { %p35_p0 = scmp.ge.s32.totalorder %s33_s19, 2  ;;  %p54_p2 = scmp.eq.s32.totalorder %s719_s16, 0 }
   0xc   : > { %p59_p3 = scmp.ne.s32.totalorder %s707_s13, %s703_s12  ;;  %p60_p5 = scmp.eq.s32.totalorder %s423_s17, 0 }
   0xd   : > { %s1008_s19 = smov (%p35_p0, %s33_s19), 0  ;;  %p790_p4 = por %p688_p1, %p54_p2 }
   0xe   : > { %p794_p6 = por %p60_p5, %p59_p3  ;;  %s101_s22 = ssub.s32 %s715_s15, %s1008_s19 }
   0xf   : > { %p102_p7 = scmp.eq.s32.totalorder %s101_s22, 0  ;;  %s104_s23 = sadd.s32 1, %s699_s11 }
  0x10   : > { %s991_s21 = scalar_select %p794_p6, 1, 0 }
  0x11   : > { %s802_s24 = scalar_select %p102_p7, %s699_s11, %s104_s23  }
  0x12   : > { %p114_p8 = scmp.ne.s32.totalorder %s699_s11, %s695_s10  ;;  %p115_p9 = scmp.eq.s32.totalorder %s423_s17, 1 }
  0x13   : > { %p120_p10 = scmp.ne.s32.totalorder %s695_s10, %s691_s9  ;;  %p121_p11 = scmp.eq.s32.totalorder %s424_s18, 1 }
  0x14   : > { %p808_p12 = por %p115_p9, %p114_p8  ;;  %p465_p1 = scmp.lt.s32.totalorder %s719_s16, 2 }
  0x15   : > { %p813_p0 = por %p121_p11, %p120_p10  ;;  %s721_s27 = smov [#allocation2]  }
  0x16   : > { %s992_s25 = scalar_select %p808_p12, 1, 0 }
  0x17   : > { %s993_s26 = scalar_select %p813_p0, 1, 0 }
  0x18   : > { %s155_s28 = sshll.u32 %s721_s27, 4  ;;  %p820_p2 = pnand %p465_p1, %p790_p4  ;;  %s156_s28 = int_to_ptr.vmem [resolvable:$true] %s155_s28 }
  0x19   : > { %s552_s4 = scalar_lea.hbm %s985_s0, 256 }
  0x1a   : > { %p553_p3 = scmp.ne.s32.totalorder %s985_s0, %s552_s4  ;;  %p554_p5 = pneg %p820_p2 }
  0x1b   : > { %p559_p8 = scmp.lt.u32.totalorder %s552_s4, %s552_s4  ;;  %p561_p9 = scmp.lt.u32.totalorder %s552_s4, %s985_s0 }
  0x1c   : > { %p555_p7 = pnand %p554_p5, %p553_p3 }
  0x1d   : > { %p562_p10 = por %p561_p9, %p559_p8 }
  0x1e   : > { %p556_p4 = pneg %p555_p7 }
  0x20   : > { %p563_p11 = pnand %p562_p10, %p556_p4 }
  0x22   : > { %566 = shalt.err (!%p563_p11)
}
  0x23   : > { %s567_s12 = scalar_lea.vmem %s156_s28, 256  ;;  %s574_s17 = scalar_lea.vmem %s156_s28, 512 }
  0x24   : > { %p568_p1 = scmp.ne.s32.totalorder %s156_s28, %s567_s12  ;;  %p575_p12 = scmp.lt.s32.totalorder %s156_s28, %s156_s28 }
  0x25   : > { %p576_p6 = scmp.lt.s32.totalorder %s574_s17, %s567_s12 }
  0x26   : > { %p570_p13 = pnand %p568_p1, %p554_p5 }
  0x27   : > { %p577_p3 = por %p576_p6, %p575_p12 }
  0x28   : > { %p571_p0 = pneg %p570_p13 }
  0x2a   : > { %p578_p7 = pnand %p577_p3, %p571_p0 }
  0x2c   : > { %581 = shalt.err (!%p578_p7)
}
  0x2d   : > { %s722_s18 = smov 128   ;;  %s723_s20 = smov 8  }
  0x2e   : > { %457 = dma.hbm_to_vmem [thread:$0]  (!%p820_p2), %s985_s0, 256, %s156_s28, [#allocation3], %s722_s18, %s722_s18, %s723_s20  }
  0x2f   : > { %p433_p13 = scmp.ge.s32.totalorder %s719_s16, 1  ;;  %p187_p4 = scmp.lt.s32.totalorder %s719_s16, 3 }
  0x30   : > { %s724_s30 = smov [#allocation5]   ;;  %s582_s6 = scalar_lea.hbm %s986_s1, 256 }
  0x31   : > { %p851_p8 = pnand %p433_p13, %p187_p4  ;;  %s179_s3 = sshll.u32 %s724_s30, 4  ;;  %s180_s3 = int_to_ptr.vmem [resolvable:$true] %s179_s3 }
  0x32   : > { %p583_p6 = scmp.ne.s32.totalorder %s986_s1, %s582_s6  ;;  %p589_p9 = scmp.lt.u32.totalorder %s582_s6, %s582_s6 }
  0x33   : > { %s995_s27 = scalar_select %p851_p8, 1, 0 }
  0x34   : > { %p585_p12 = pnand %p583_p6, %p554_p5  ;;  %p591_p10 = scmp.lt.u32.totalorder %s582_s6, %s986_s1 }
  0x36   : > { %p586_p0 = pneg %p585_p12  ;;  %p592_p11 = por %p591_p10, %p589_p9 }
  0x38   : > { %p593_p1 = pnand %p592_p11, %p586_p0 }
  0x3a   : > { %596 = shalt.err (!%p593_p1)
}
  0x3b   : > { %s597_s17 = scalar_lea.vmem %s180_s3, 256  ;;  %s604_s22 = scalar_lea.vmem %s180_s3, 512 }
  0x3c   : > { %p598_p3 = scmp.ne.s32.totalorder %s180_s3, %s597_s17  ;;  %p605_p4 = scmp.lt.s32.totalorder %s180_s3, %s180_s3 }
  0x3d   : > { %p606_p8 = scmp.lt.s32.totalorder %s604_s22, %s597_s17 }
  0x3e   : > { %p600_p7 = pnand %p598_p3, %p554_p5 }
  0x3f   : > { %p607_p6 = por %p606_p8, %p605_p4 }
  0x40   : > { %p601_p13 = pneg %p600_p7 }
  0x42   : > { %p608_p12 = pnand %p607_p6, %p601_p13 }
  0x44   : > { %611 = shalt.err (!%p608_p12)
}
  0x45   : > { %460 = dma.hbm_to_vmem [thread:$0]  (!%p820_p2), %s986_s1, 256, %s180_s3, [#allocation6], %s722_s18, %s722_s18, %s723_s20  }
  0x46   : > { %p996_p0 = scmp.ne.s32.totalorder %s995_s27, 0 }
  0x47   : > { %s193_s4 = sand.u32 (!%p996_p0), 1, %s707_s13   ;;  %p997_p5 = scmp.ne.s32.totalorder (!%p996_p0), %s991_s21, 0 }
  0x48   : > { %191 = sbr.rel (%p996_p0) target bundleno = 159 (0x9f), region = 28  ;;  %s434_s5 = sshll.u32 (!%p996_p0), %s193_s4, 4 }
  0x49   : > { %s194_s6 = scalar_lea.sflag (!%p996_p0), [#allocation3], %s193_s4  ;;  %s881_s7 = scalar_lea.vmem (!%p996_p0), [#allocation2], %s434_s5 }
  0x4f   : > { %677 = dma.done.wait (%p997_p5), %s194_s6, 256  }
  0x50   : > { %679 = vsyncadd (%p997_p5), %s194_s6, 4294967040  ;;  %s203_s29 = scalar_lea.sflag [#allocation6], %s193_s4  ;;  %s887_s8 = scalar_lea.vmem [#allocation5], %s434_s5 }
  0x51   : > { %681 = dma.done.wait (%p997_p5), %s203_s29, 256  }
  0x52   : > { %683 = vsyncadd (%p997_p5), %s203_s29, 4294967040  ;;  %s229_s18 = sand.u32 1, %s695_s10   ;;  %s437_s20 = sshll.u32 %s711_s14, 4  ;;  %v725_v0 = vmov 0.0  }
  0x53   : > { %s436_s27 = sshll.u32 %s229_s18, 4  ;;  %s897_s3 = ssub.s32 16, %s437_s20 }
  0x54   : > { %s899_s28 = scalar_lea.vmem [#allocation7], %s436_s27  ;;  %p438_p2 = scmp.lt.s32.totalorder %s897_s3, 16 }
  0x55   : > { %244 = vst [vmem:[%s899_s28] sm:$0xff] %v725_v0  ;;  %245 = vst [vmem:[%s899_s28 + $0x8] sm:$0xff] %v725_v0  ;;  %v253_v1 = vld [vmem:[%s881_s7] sm:$0xff] (!%p438_p2)  ;;  %v254_v4 = vld [vmem:[%s881_s7 + $0x8] sm:$0xff] (!%p438_p2) }
  0x56   : > { %252 = sbr.rel (%p438_p2) target bundleno = 108 (0x6c), region = 44  ;;  %v255_v2 = vld [vmem:[%s887_s8] sm:$0xff] (!%p438_p2)  ;;  %v256_v5 = vld [vmem:[%s887_s8 + $0x8] sm:$0xff] (!%p438_p2) }
  0x57   : > { %v257_v3 = vmul.f32 (!%p438_p2), %v255_v2, %v253_v1  ;;  %v258_v6 = vmul.f32 (!%p438_p2), %v256_v5, %v254_v4 }
  0x59   : > { %v259_v7 = vsub.f32 (!%p438_p2), 0.0, %v257_v3  ;;  %v260_v8 = vsub.f32 (!%p438_p2), 0.0, %v258_v6 }
  0x5b   : > { %v261_v9 = vmul.f32 (!%p438_p2), 1.442695, %v259_v7  ;;  %v263_v10 = vmul.f32 (!%p438_p2), 1.442695, %v260_v8 }
  0x5c   : > { %v265_v11 = vld [vmem:[%s899_s28] sm:$0xff] (!%p438_p2)  ;;  %v266_v12 = vld [vmem:[%s899_s28 + $0x8] sm:$0xff] (!%p438_p2) }
  0x5d   : > { %544 = vpow2.f32 %v261_v9 }
  0x5e   : > { %546 = vpow2.f32 %v263_v10 }
  0x67   : > { %v545_v13 = vpop.eup %544 }
  0x68   : > { %v547_v14 = vpop.eup %546  ;;  %v269_v15 = vadd.f32 %v545_v13, %v265_v11 }
  0x69   : > { %v270_v16 = vadd.f32 %v547_v14, %v266_v12 }
  0x6a   : > { %271 = vst [vmem:[%s899_s28] sm:$0xff] %v269_v15 }
  0x6b   : > { %272 = vst [vmem:[%s899_s28 + $0x8] sm:$0xff] %v270_v16 }
  0x6c PF: > { %p439_p8 = scmp.ge.s32.totalorder %s897_s3, 16 }
  0x6d   : > { %v277_v17 = vld [vmem:[%s881_s7] sm:$0xff] (!%p439_p8)  ;;  %v278_v20 = vld [vmem:[%s881_s7 + $0x8] sm:$0xff] (!%p439_p8)  ;;  %v289_v24 = vlaneseq (!%p439_p8)  ;;  %v292_v29 = vstv (!%p439_p8), %s897_s3 }
  0x6e   : > { %276 = sbr.rel (%p439_p8) target bundleno = 133 (0x85), region = 48  ;;  %v279_v18 = vld [vmem:[%s887_s8] sm:$0xff] (!%p439_p8)  ;;  %v280_v21 = vld [vmem:[%s887_s8 + $0x8] sm:$0xff] (!%p439_p8) }
  0x6f   : > { %v281_v19 = vmul.f32 (!%p439_p8), %v279_v18, %v277_v17  ;;  %v282_v22 = vmul.f32 (!%p439_p8), %v280_v21, %v278_v20  ;;  %v290_v28 = vshrl.u32 (!%p439_p8), %v289_v24, 7 }
  0x71   : > { %v283_v23 = vsub.f32 (!%p439_p8), 0.0, %v281_v19  ;;  %v284_v25 = vsub.f32 (!%p439_p8), 0.0, %v282_v22  ;;  %v291_v30 = vadd.s32 (!%p439_p8), 8, %v290_v28  ;;  %vm293_vm0 = vcmp.lt.s32.totalorder (!%p439_p8), %v290_v28, %v292_v29  ;;  %v297_v31 = vld [vmem:[%s899_s28] sm:$0xff] (!%p439_p8) }
  0x72   : > { %v298_v33 = vld [vmem:[%s899_s28 + $0x8] sm:$0xff] (!%p439_p8) }
  0x73   : > { %v285_v26 = vmul.f32 (!%p439_p8), 1.442695, %v283_v23  ;;  %v287_v27 = vmul.f32 (!%p439_p8), 1.442695, %v284_v25  ;;  %vm294_vm1 = vcmp.lt.s32.totalorder (!%p439_p8), %v291_v30, %v292_v29 }
  0x75   : > { %548 = vpow2.f32 %v285_v26 }
  0x76   : > { %550 = vpow2.f32 %v287_v27 }
  0x7f   : > { %v549_v32 = vpop.eup %548 }
  0x80   : > { %v551_v34 = vpop.eup %550  ;;  %v295_v35 = vsel %vm293_vm0, %v549_v32, 0.0 }
  0x81   : > { %v301_v36 = vadd.f32 %v297_v31, %v295_v35  ;;  %v296_v37 = vsel %vm294_vm1, %v551_v34, 0.0 }
  0x82   : > { %v302_v38 = vadd.f32 %v298_v33, %v296_v37 }
  0x83   : > { %303 = vst [vmem:[%s899_s28] sm:$0xff] %v301_v36 }
  0x84   : > { %304 = vst [vmem:[%s899_s28 + $0x8] sm:$0xff] %v302_v38 }
  0x85 PF: > { %s447_s21 = sshll.u32 %s711_s14, 8  ;;  %s319_s23 = sshll.u32 %s899_s28, 4  ;;  %s929_s23 = int_to_ptr.vmem [resolvable:$true] %s319_s23 }
  0x86   : > { %s926_s22 = scalar_lea.hbm %s987_s2, %s447_s21  ;;  %s933_s30 = scalar_lea.sflag [#allocation4], %s229_s18 }
  0x87   : > { %s612_s4 = scalar_lea.vmem %s929_s23, 256  ;;  %p998_p10 = scmp.ne.s32.totalorder %s992_s25, 0 }
  0x88   : > { %p613_p9 = scmp.ne.s32.totalorder %s929_s23, %s612_s4  ;;  %s726_s14 = smov [#allocation7]  }
  0x89   : > { %s616_s5 = sshll.u32 %s726_s14, 4  ;;  %s617_s5 = int_to_ptr.vmem [resolvable:$false] %s616_s5 }
  0x8a   : > { %p614_p11 = pnand %p613_p9, %p998_p10  ;;  %s618_s6 = scalar_lea.vmem %s617_s5, 512 }
  0x8b   : > { %p619_p3 = scmp.lt.s32.totalorder %s929_s23, %s617_s5  ;;  %p620_p7 = scmp.lt.s32.totalorder %s618_s6, %s612_s4 }
  0x8c   : > { %p615_p1 = pneg %p614_p11 }
  0x8d   : > { %p621_p13 = por %p620_p7, %p619_p3 }
  0x8f   : > { %p622_p4 = pnand %p621_p13, %p615_p1 }
  0x91   : > { %625 = shalt.err (!%p622_p4)
}
  0x92   : > { %s626_s7 = scalar_lea.hbm %s926_s22, 256  ;;  %s630_s18 = scalar_lea.hbm %s987_s2, 512 }
  0x93   : > { %p627_p6 = scmp.ne.s32.totalorder %s926_s22, %s626_s7  ;;  %p631_p5 = scmp.lt.u32.totalorder %s926_s22, %s987_s2 }
  0x94   : > { %p632_p2 = scmp.lt.u32.totalorder %s630_s18, %s626_s7  ;;  %p634_p9 = scmp.lt.u32.totalorder %s626_s7, %s926_s22 }
  0x95   : > { %p628_p12 = pnand %p627_p6, %p998_p10 }
  0x96   : > { %p633_p8 = por %p632_p2, %p631_p5 }
  0x97   : > { %p629_p0 = pneg %p628_p12 }
  0x98   : > { %p635_p11 = por %p634_p9, %p633_p8 }
  0x9a   : > { %p636_p1 = pnand %p635_p11, %p629_p0 }
  0x9c   : > { %639 = shalt.err (!%p636_p1)
}
  0x9d   : > { %s727_s3 = smov 128   ;;  %s728_s28 = smov 8  }
  0x9e   : > { %452 = dma.vmem_to_hbm [thread:$0]  (%p998_p10), %s929_s23, 256, %s926_s22, %s933_s30, %s727_s3, %s727_s3, %s728_s28  }
  0x9f PF: > { %s334_s21 = sand.u32 1, %s691_s9   ;;  %p999_p3 = scmp.ne.s32.totalorder %s993_s26, 0 }
  0xa0   : > { %p1000_p7 = scmp.ge.s32.totalorder %s719_s16, 2  ;;  %s335_s12 = scalar_lea.sflag [#allocation4], %s334_s21 }
  0xa2   : > { %p462_p13 = pnand %p1000_p7, %p999_p3 }
  0xa4   : > { %685 = dma.done.wait (!%p462_p13), %s335_s12, 256  }
  0xa5   : > { %687 = vsyncadd (!%p462_p13), %s335_s12, 4294967040  ;;  %s21_s16 = sadd.s32 1, %s719_s16   ;;  %s1001_s9 = smov %s695_s10 }
  0xa6   : > { %p18_p4 = scmp.ge.s32.totalorder %s21_s16, 4   ;;  %s1002_s10 = smov %s699_s11 }
  0xa7   : > { %s1003_s11 = smov %s802_s24  ;;  %s1004_s12 = smov %s707_s13 }
  0xa8   : > { %s975_s13 = smov 0   ;;  %s1005_s14 = smov %s715_s15 }
  0xa9   : > { %s1006_s15 = smov %s1008_s19  ;;  %20 = sbr.rel (!%p18_p4) target bundleno = 9 (0x9), region = 98 }
  0xb0   :  { %340 = vsyncpa [#allocation3], 1 }
  0xb1   :  { %342 = vsyncpa [#allocation3 + $0x1], 1 }
  0xb2   :  { %343 = vsyncpa [#allocation6], 1 }
  0xb3   :  { %345 = vsyncpa [#allocation6 + $0x1], 1 }
  0xb4   :  { %346 = vsyncpa [#allocation4], 1 }
  0xb5   :  { %348 = vsyncpa [#allocation4 + $0x1], 1 }

</bundles_post_ra>
